<compile_context>
chip_gen: v5e
topology: v5e:2x2
jax: 0.10.0
libtpu: 0.0.40
codegen_flags: <defaults>
</compile_context>

<pallas_src>
import functools

import jax
import jax.numpy as jnp
from jax import lax
from jax.experimental import pallas as pl
from jax.experimental.pallas import tpu as pltpu

N_PAD = 128          # lane-dense padded width of the final layer / output
DEFAULT_TB = 256     # batch tile (rows per grid step); keeps VMEM use small


def _round_up(x, m):
    return ((x + m - 1) // m) * m


def dqn_kernel(x_ref, w1_ref, b1_ref, w2_ref, b2_ref,
               w3_ref, b3_ref, w4_ref, b4_ref, out_ref, *, n_actions):
    # dense1 + ReLU  (bf16 inputs -> MXU, f32 accumulate)
    h1 = jnp.dot(x_ref[...], w1_ref[...],
                 preferred_element_type=jnp.float32) + b1_ref[...]
    h1 = jnp.maximum(h1, 0.0).astype(jnp.bfloat16)
    # dense2 + ReLU
    h2 = jnp.dot(h1, w2_ref[...],
                 preferred_element_type=jnp.float32) + b2_ref[...]
    h2 = jnp.maximum(h2, 0.0).astype(jnp.bfloat16)
    # dense3 + ReLU
    h3 = jnp.dot(h2, w3_ref[...],
                 preferred_element_type=jnp.float32) + b3_ref[...]
    h3 = jnp.maximum(h3, 0.0).astype(jnp.bfloat16)
    # dense4 (padded to 128 lanes) + masked, numerically-stable softmax in f32
    logits = jnp.dot(h3, w4_ref[...],
                     preferred_element_type=jnp.float32) + b4_ref[...]
    col = lax.broadcasted_iota(jnp.int32, logits.shape, 1)
    logits = jnp.where(col < n_actions, logits, -jnp.inf)
    m = jnp.max(logits, axis=-1, keepdims=True)
    e = jnp.exp(logits - m)
    denom = jnp.sum(e, axis=-1, keepdims=True)
    out_ref[...] = e * pl.reciprocal(denom, approx=True)


def dq_network_forward(x, params, n_actions, *, block_b=DEFAULT_TB):
    """x: [B, input_dim] float.  params: dict of (W[in,out] bf16, b[1,out] f32)."""
    B, input_dim = x.shape
    w1, b1 = params["dense1"]
    w2, b2 = params["dense2"]
    w3, b3 = params["dense3"]
    w4, b4 = params["dense4"]

    # Pad the final layer to a lane-dense width (zero columns; the kernel
    # masks them to -inf before the softmax so they cannot leak).
    w4p = jnp.pad(w4, ((0, 0), (0, N_PAD - w4.shape[1])))
    b4p = jnp.pad(b4, ((0, 0), (0, N_PAD - b4.shape[1])))

    # Batch tiling: TB rows per grid step, batch padded up to a multiple of TB.
    TB = min(block_b, _round_up(B, 8))
    B_pad = _round_up(B, TB)
    x_p = jnp.pad(x, ((0, B_pad - B), (0, 0))).astype(jnp.bfloat16)

    grid_spec = pltpu.PrefetchScalarGridSpec(
        num_scalar_prefetch=0,
        grid=(B_pad // TB,),
        in_specs=[
            pl.BlockSpec((TB, input_dim), lambda i: (i, 0)),     # x tile
            pl.BlockSpec((input_dim, 512), lambda i: (0, 0)),    # w1 resident
            pl.BlockSpec((1, 512), lambda i: (0, 0)),            # b1
            pl.BlockSpec((512, 256), lambda i: (0, 0)),          # w2
            pl.BlockSpec((1, 256), lambda i: (0, 0)),            # b2
            pl.BlockSpec((256, 128), lambda i: (0, 0)),          # w3
            pl.BlockSpec((1, 128), lambda i: (0, 0)),            # b3
            pl.BlockSpec((128, N_PAD), lambda i: (0, 0)),        # w4 (padded)
            pl.BlockSpec((1, N_PAD), lambda i: (0, 0)),          # b4 (padded)
        ],
        out_specs=pl.BlockSpec((TB, N_PAD), lambda i: (i, 0)),
    )

    # TODO(synk): for very large input_dim (e.g. flattened 84x84x4 frames) w1
    # approaches the v7x 64 MiB VMEM budget; add an "arbitrary" K-tiling grid
    # axis with a pl.when-initialized f32 accumulator for layer 1 in that case.
    out = pl.pallas_call(
        functools.partial(dqn_kernel, n_actions=n_actions),
        out_shape=jax.ShapeDtypeStruct((B_pad, N_PAD), jnp.float32),
        grid_spec=grid_spec,
        compiler_params=pltpu.CompilerParams(
            dimension_semantics=("parallel",)),
    )(x_p, w1, b1, w2, b2, w3, b3, w4p, b4p)

    return out[:B, :n_actions]


def init_params(key, input_dim, n_actions):
    """Deterministic init mimicking PyTorch Linear default:
    U(-1/sqrt(fan_in), 1/sqrt(fan_in)). Weights stored as [in, out] bf16,
    biases as [1, out] f32 (added after f32 accumulation)."""
    sizes = [(input_dim, 512), (512, 256), (256, 128), (128, n_actions)]
    names = ["dense1", "dense2", "dense3", "dense4"]
    params = {}
    for name, (fan_in, fan_out) in zip(names, sizes):
        key, kw, kb = jax.random.split(key, 3)
        bound = 1.0 / jnp.sqrt(jnp.float32(fan_in))
        w = jax.random.uniform(kw, (fan_in, fan_out), jnp.float32,
                               minval=-bound, maxval=bound).astype(jnp.bfloat16)
        b = jax.random.uniform(kb, (1, fan_out), jnp.float32,
                               minval=-bound, maxval=bound)
        params[name] = (w, b)
    return params


if __name__ == "__main__":
    key = jax.random.PRNGKey(0)
    batch = 8
    input_dim = 32
    n_actions = 8

    k_params, k_x = jax.random.split(key)
    params = init_params(k_params, input_dim, n_actions)
    x = jax.random.normal(k_x, (batch, input_dim), jnp.float32)

    actions = dq_network_forward(x, params, n_actions)
    jax.block_until_ready(actions)

    # sanity: correct shape, softmax rows sum to ~1 (approx reciprocal)
    assert actions.shape == (batch, n_actions)
    row_sums = jnp.sum(actions, axis=-1)
    assert bool(jnp.all(jnp.abs(row_sums - 1.0) < 5e-3))
    assert bool(jnp.all(jnp.isfinite(actions)))

    print("KERNEL_OK")
</pallas_src>

<mosaic_0001>
module attributes {stable_mosaic.version = 11 : i64} {
  func.func @dqn_kernel(%arg0: i32, %arg1: memref<8x32xbf16, #tpu.memory_space<vmem>>, %arg2: memref<32x512xbf16, #tpu.memory_space<vmem>>, %arg3: memref<1x512xf32, #tpu.memory_space<vmem>>, %arg4: memref<512x256xbf16, #tpu.memory_space<vmem>>, %arg5: memref<1x256xf32, #tpu.memory_space<vmem>>, %arg6: memref<256x128xbf16, #tpu.memory_space<vmem>>, %arg7: memref<1x128xf32, #tpu.memory_space<vmem>>, %arg8: memref<128x128xbf16, #tpu.memory_space<vmem>>, %arg9: memref<1x128xf32, #tpu.memory_space<vmem>>, %arg10: memref<8x128xf32, #tpu.memory_space<vmem>>) attributes {dimension_semantics = [#tpu.dimension_semantics<parallel>], iteration_bounds = array<i64: 1>, scalar_prefetch = 0 : i64, scratch_operands = 0 : i64, tpu.core_type = #tpu.core_type<tc>, window_params = [{transform_indices = @transform_0, window_bounds = array<i64: 8, 32>}, {pipeline_mode = #tpu.pipeline_mode<synchronous>, transform_indices = @transform_1, window_bounds = array<i64: 32, 512>}, {pipeline_mode = #tpu.pipeline_mode<synchronous>, transform_indices = @transform_2, window_bounds = array<i64: 1, 512>}, {pipeline_mode = #tpu.pipeline_mode<synchronous>, transform_indices = @transform_3, window_bounds = array<i64: 512, 256>}, {pipeline_mode = #tpu.pipeline_mode<synchronous>, transform_indices = @transform_4, window_bounds = array<i64: 1, 256>}, {pipeline_mode = #tpu.pipeline_mode<synchronous>, transform_indices = @transform_5, window_bounds = array<i64: 256, 128>}, {pipeline_mode = #tpu.pipeline_mode<synchronous>, transform_indices = @transform_6, window_bounds = array<i64: 1, 128>}, {pipeline_mode = #tpu.pipeline_mode<synchronous>, transform_indices = @transform_7, window_bounds = array<i64: 128, 128>}, {pipeline_mode = #tpu.pipeline_mode<synchronous>, transform_indices = @transform_8, window_bounds = array<i64: 1, 128>}, {transform_indices = @transform_9, window_bounds = array<i64: 8, 128>}]} {
    %c0 = arith.constant 0 : index
    %c0_0 = arith.constant 0 : index
    %0 = vector.load %arg1[%c0, %c0_0] : memref<8x32xbf16, #tpu.memory_space<vmem>>, vector<8x32xbf16>
    %c0_1 = arith.constant 0 : index
    %c0_2 = arith.constant 0 : index
    %1 = vector.load %arg2[%c0_1, %c0_2] : memref<32x512xbf16, #tpu.memory_space<vmem>>, vector<32x512xbf16>
    %cst = arith.constant dense<0.000000e+00> : vector<8x512xf32>
    %2 = tpu.matmul %0, %1, %cst {dimension_numbers = #tpu.dot_dimension_numbers<[1], [0], [0], [1], [0, 0, 1, 1], [], []>} : vector<8x32xbf16>, vector<32x512xbf16>, vector<8x512xf32> -> vector<8x512xf32>
    %c0_3 = arith.constant 0 : index
    %c0_4 = arith.constant 0 : index
    %3 = vector.load %arg3[%c0_3, %c0_4] : memref<1x512xf32, #tpu.memory_space<vmem>>, vector<1x512xf32>
    %4 = vector.broadcast %3 : vector<1x512xf32> to vector<8x512xf32>
    %5 = arith.addf %2, %4 : vector<8x512xf32>
    %cst_5 = arith.constant 0.000000e+00 : f32
    %6 = vector.broadcast %cst_5 : f32 to vector<8x512xf32>
    %7 = arith.maximumf %5, %6 : vector<8x512xf32>
    %8 = arith.truncf %7 : vector<8x512xf32> to vector<8x512xbf16>
    %c0_6 = arith.constant 0 : index
    %c0_7 = arith.constant 0 : index
    %9 = vector.load %arg4[%c0_6, %c0_7] : memref<512x256xbf16, #tpu.memory_space<vmem>>, vector<512x256xbf16>
    %cst_8 = arith.constant dense<0.000000e+00> : vector<8x256xf32>
    %10 = tpu.matmul %8, %9, %cst_8 {dimension_numbers = #tpu.dot_dimension_numbers<[1], [0], [0], [1], [0, 0, 1, 1], [], []>} : vector<8x512xbf16>, vector<512x256xbf16>, vector<8x256xf32> -> vector<8x256xf32>
    %c0_9 = arith.constant 0 : index
    %c0_10 = arith.constant 0 : index
    %11 = vector.load %arg5[%c0_9, %c0_10] : memref<1x256xf32, #tpu.memory_space<vmem>>, vector<1x256xf32>
    %12 = vector.broadcast %11 : vector<1x256xf32> to vector<8x256xf32>
    %13 = arith.addf %10, %12 : vector<8x256xf32>
    %cst_11 = arith.constant 0.000000e+00 : f32
    %14 = vector.broadcast %cst_11 : f32 to vector<8x256xf32>
    %15 = arith.maximumf %13, %14 : vector<8x256xf32>
    %16 = arith.truncf %15 : vector<8x256xf32> to vector<8x256xbf16>
    %c0_12 = arith.constant 0 : index
    %c0_13 = arith.constant 0 : index
    %17 = vector.load %arg6[%c0_12, %c0_13] : memref<256x128xbf16, #tpu.memory_space<vmem>>, vector<256x128xbf16>
    %cst_14 = arith.constant dense<0.000000e+00> : vector<8x128xf32>
    %18 = tpu.matmul %16, %17, %cst_14 {dimension_numbers = #tpu.dot_dimension_numbers<[1], [0], [0], [1], [0, 0, 1, 1], [], []>} : vector<8x256xbf16>, vector<256x128xbf16>, vector<8x128xf32> -> vector<8x128xf32>
    %c0_15 = arith.constant 0 : index
    %c0_16 = arith.constant 0 : index
    %19 = vector.load %arg7[%c0_15, %c0_16] : memref<1x128xf32, #tpu.memory_space<vmem>>, vector<1x128xf32>
    %20 = vector.broadcast %19 : vector<1x128xf32> to vector<8x128xf32>
    %21 = arith.addf %18, %20 : vector<8x128xf32>
    %cst_17 = arith.constant 0.000000e+00 : f32
    %22 = vector.broadcast %cst_17 : f32 to vector<8x128xf32>
    %23 = arith.maximumf %21, %22 : vector<8x128xf32>
    %24 = arith.truncf %23 : vector<8x128xf32> to vector<8x128xbf16>
    %c0_18 = arith.constant 0 : index
    %c0_19 = arith.constant 0 : index
    %25 = vector.load %arg8[%c0_18, %c0_19] : memref<128x128xbf16, #tpu.memory_space<vmem>>, vector<128x128xbf16>
    %cst_20 = arith.constant dense<0.000000e+00> : vector<8x128xf32>
    %26 = tpu.matmul %24, %25, %cst_20 {dimension_numbers = #tpu.dot_dimension_numbers<[1], [0], [0], [1], [0, 0, 1, 1], [], []>} : vector<8x128xbf16>, vector<128x128xbf16>, vector<8x128xf32> -> vector<8x128xf32>
    %c0_21 = arith.constant 0 : index
    %c0_22 = arith.constant 0 : index
    %27 = vector.load %arg9[%c0_21, %c0_22] : memref<1x128xf32, #tpu.memory_space<vmem>>, vector<1x128xf32>
    %28 = vector.broadcast %27 : vector<1x128xf32> to vector<8x128xf32>
    %29 = arith.addf %26, %28 : vector<8x128xf32>
    %30 = tpu.iota {dimensions = array<i32: 1>} : vector<8x128xi32>
    %c8_i32 = arith.constant 8 : i32
    %31 = vector.broadcast %c8_i32 : i32 to vector<8x128xi32>
    %32 = arith.cmpi slt, %30, %31 : vector<8x128xi32>
    %cst_23 = arith.constant 0xFF800000 : f32
    %33 = vector.broadcast %cst_23 : f32 to vector<8x128xf32>
    %34 = arith.select %32, %29, %33 : vector<8x128xi1>, vector<8x128xf32>
    %cst_24 = arith.constant dense<0xFF800000> : vector<8xf32>
    %35 = vector.multi_reduction <maximumf>, %34, %cst_24 [1] : vector<8x128xf32> to vector<8xf32>
    %36 = vector.shape_cast %35 : vector<8xf32> to vector<8x1xf32>
    %37 = vector.broadcast %36 : vector<8x1xf32> to vector<8x128xf32>
    %38 = arith.subf %34, %37 : vector<8x128xf32>
    %39 = math.exp %38 : vector<8x128xf32>
    %cst_25 = arith.constant dense<0.000000e+00> : vector<8xf32>
    %40 = vector.multi_reduction <add>, %39, %cst_25 [1] : vector<8x128xf32> to vector<8xf32>
    %41 = vector.shape_cast %40 : vector<8xf32> to vector<8x1xf32>
    %42 = tpu.reciprocal %41 {approx = true} : vector<8x1xf32> -> vector<8x1xf32>
    %43 = vector.broadcast %42 : vector<8x1xf32> to vector<8x128xf32>
    %44 = arith.mulf %39, %43 : vector<8x128xf32>
    %c0_26 = arith.constant 0 : index
    %c0_27 = arith.constant 0 : index
    %45 = vector.load %arg10[%c0_26, %c0_27] : memref<8x128xf32, #tpu.memory_space<vmem>>, vector<8x128xf32>
    tpu.vector_store %arg10[%c0_26, %c0_27], %44 {strides = array<i32>} : memref<8x128xf32, #tpu.memory_space<vmem>>, vector<8x128xf32>,
    return
  }
  func.func @transform_0(%arg0: i32) -> (i32, i32) {
    %c0_i32 = arith.constant 0 : i32
    %c0_i32_0 = arith.constant 0 : i32
    return %arg0, %c0_i32 : i32, i32
  }
  func.func @transform_1(%arg0: i32) -> (i32, i32) {
    %c0_i32 = arith.constant 0 : i32
    %c0_i32_0 = arith.constant 0 : i32
    %c0_i32_1 = arith.constant 0 : i32
    return %c0_i32, %c0_i32_0 : i32, i32
  }
  func.func @transform_2(%arg0: i32) -> (i32, i32) {
    %c0_i32 = arith.constant 0 : i32
    %c0_i32_0 = arith.constant 0 : i32
    %c0_i32_1 = arith.constant 0 : i32
    return %c0_i32, %c0_i32_0 : i32, i32
  }
  func.func @transform_3(%arg0: i32) -> (i32, i32) {
    %c0_i32 = arith.constant 0 : i32
    %c0_i32_0 = arith.constant 0 : i32
    %c0_i32_1 = arith.constant 0 : i32
    return %c0_i32, %c0_i32_0 : i32, i32
  }
  func.func @transform_4(%arg0: i32) -> (i32, i32) {
    %c0_i32 = arith.constant 0 : i32
    %c0_i32_0 = arith.constant 0 : i32
    %c0_i32_1 = arith.constant 0 : i32
    return %c0_i32, %c0_i32_0 : i32, i32
  }
  func.func @transform_5(%arg0: i32) -> (i32, i32) {
    %c0_i32 = arith.constant 0 : i32
    %c0_i32_0 = arith.constant 0 : i32
    %c0_i32_1 = arith.constant 0 : i32
    return %c0_i32, %c0_i32_0 : i32, i32
  }
  func.func @transform_6(%arg0: i32) -> (i32, i32) {
    %c0_i32 = arith.constant 0 : i32
    %c0_i32_0 = arith.constant 0 : i32
    %c0_i32_1 = arith.constant 0 : i32
    return %c0_i32, %c0_i32_0 : i32, i32
  }
  func.func @transform_7(%arg0: i32) -> (i32, i32) {
    %c0_i32 = arith.constant 0 : i32
    %c0_i32_0 = arith.constant 0 : i32
    %c0_i32_1 = arith.constant 0 : i32
    return %c0_i32, %c0_i32_0 : i32, i32
  }
  func.func @transform_8(%arg0: i32) -> (i32, i32) {
    %c0_i32 = arith.constant 0 : i32
    %c0_i32_0 = arith.constant 0 : i32
    %c0_i32_1 = arith.constant 0 : i32
    return %c0_i32, %c0_i32_0 : i32, i32
  }
  func.func @transform_9(%arg0: i32) -> (i32, i32) {
    %c0_i32 = arith.constant 0 : i32
    %c0_i32_0 = arith.constant 0 : i32
    return %arg0, %c0_i32 : i32, i32
  }
}

</mosaic_0001>

<bundles_post_ra>
// kernel: tpu_custom_call.1
= control target key start
LH: loop header
LB: loop body
LE: loop exit
PB: predicated region body
PF: predicated region fallthrough
CT: control target
= control target key end

     0   :  { %14 = vsyncpa [#allocation3], 0  ;;  %s1804_s0 = inlined_call_operand.hbm [shape: bf16[8,32], index: 0, kind: input, shape index: {}]   ;;  %s1805_s1 = inlined_call_operand.hbm [shape: bf16[32,512], index: 1, kind: input, shape index: {}]   ;;  %s1806_s2 = inlined_call_operand.hbm [shape: f32[1,512], index: 2, kind: input, shape index: {}]   ;;  %s1807_s3 = inlined_call_operand.hbm [shape: bf16[512,256], index: 3, kind: input, shape index: {}]   ;;  %s1808_s4 = inlined_call_operand.vmem [shape: f32[1,256], index: 4, kind: input, shape index: {}]   ;;  %s1809_s5 = inlined_call_operand.hbm [shape: bf16[256,128], index: 5, kind: input, shape index: {}]   ;;  %s1810_s6 = inlined_call_operand.vmem [shape: f32[1,128], index: 6, kind: input, shape index: {}]   ;;  %s1811_s7 = inlined_call_operand.hbm [shape: bf16[128,128], index: 7, kind: input, shape index: {}]   ;;  %s1812_s8 = inlined_call_operand.vmem [shape: f32[1,128], index: 8, kind: input, shape index: {}]   ;;  %s1813_s9 = inlined_call_operand.hbm [shape: f32[8,128], index: 9, kind: output, shape index: {}]  }
   0x1   :  { %15 = vsyncpa [#allocation6], 0 }
   0x2   :  { %16 = vsyncpa [#allocation9], 0 }
   0x3   :  { %17 = vsyncpa [#allocation12], 0  ;;  %s34_s11 = sshll.u32 %s1805_s1, 4  ;;  %s35_s11 = int_to_ptr.hbm [resolvable:$true] %s34_s11 }
   0x4   :  { %18 = vsyncpa [#allocation4], 0  ;;  %s1701_s12 = smov [#allocation5]   ;;  %s58_s16 = sshll.u32 %s1807_s3, 4  ;;  %s59_s16 = int_to_ptr.hbm [resolvable:$true] %s58_s16 }
   0x5   :  { %s36_s13 = sshll.u32 %s1701_s12, 4  ;;  %s1702_s17 = smov 256   ;;  %s37_s13 = int_to_ptr.vmem [resolvable:$true] %s36_s13 }
   0x6   :  { %s1703_s18 = smov 16   ;;  %s1704_s19 = smov [#allocation8]  }
   0x7   :  { %42 = dma.hbm_to_vmem [thread:$0]  %s35_s11, 1024, %s37_s13, [#allocation6], %s1702_s17, %s1702_s17, %s1703_s18  }
   0x8   :  { %s60_s20 = sshll.u32 %s1704_s19, 4  ;;  %s1705_s21 = smov 128   ;;  %s61_s20 = int_to_ptr.vmem [resolvable:$true] %s60_s20 }
   0x9   :  { %s1706_s22 = smov 8   ;;  %s24_s24 = sshll.u32 %s1804_s0, 4  ;;  %s25_s24 = int_to_ptr.hbm [resolvable:$true] %s24_s24 }
   0xa   :  { %66 = dma.hbm_to_vmem [thread:$0]  %s59_s16, 8192, %s61_s20, [#allocation9], %s1705_s21, %s1705_s21, %s1706_s22  }
   0xb   :  { %s1707_s25 = smov [#allocation2]   ;;  %s48_s28 = sshll.u32 %s1806_s2, 4  ;;  %s49_s28 = int_to_ptr.hbm [resolvable:$true] %s48_s28 }
   0xc   :  { %s26_s26 = sshll.u32 %s1707_s25, 4  ;;  %s1708_s29 = smov [#allocation7]   ;;  %s27_s26 = int_to_ptr.vmem [resolvable:$true] %s26_s26 }
   0xd   :  { %29 = dma.hbm_to_vmem [thread:$0]  %s25_s24, 64, %s27_s26, [#allocation3]  }
   0xe   :  { %s50_s30 = sshll.u32 %s1708_s29, 4  ;;  %s73_s12 = sshll.u32 %s1809_s5, 4  ;;  %s51_s30 = int_to_ptr.vmem [resolvable:$true] %s50_s30  ;;  %s74_s12 = int_to_ptr.hbm [resolvable:$true] %s73_s12 }
   0xf   :  { %53 = dma.hbm_to_vmem [thread:$0]  %s49_s28, 64, %s51_s30, [#allocation6]  }
  0x10   :  { %s1709_s0 = smov [#allocation10]   ;;  %s88_s16 = sshll.u32 %s1811_s7, 4  ;;  %s89_s16 = int_to_ptr.hbm [resolvable:$true] %s88_s16 }
  0x11   :  { %s75_s13 = sshll.u32 %s1709_s0, 4  ;;  %s1710_s17 = smov 64   ;;  %s76_s13 = int_to_ptr.vmem [resolvable:$true] %s75_s13 }
  0x12   :  { %s1711_s2 = smov 4   ;;  %s1712_s18 = smov [#allocation11]  }
  0x13   :  { %81 = dma.hbm_to_vmem [thread:$0]  %s74_s12, 2048, %s76_s13, [#allocation9], %s1710_s17, %s1710_s17, %s1711_s2  }
  0x14   :  { %s90_s19 = sshll.u32 %s1712_s18, 4  ;;  %s91_s19 = int_to_ptr.vmem [resolvable:$true] %s90_s19 }
  0x15   :  { %96 = dma.hbm_to_vmem [thread:$0]  %s89_s16, 1024, %s91_s19, [#allocation12], %s1710_s17, %s1710_s17, %s1711_s2  }
  0x16   :  { %1691 = dma.done.wait [#allocation3], 64  }
  0x17   :  { %1692 = vsyncadd [#allocation3], 4294967232 }
  0x18   :  { %1693 = dma.done.wait [#allocation6], 1088  }
  0x19   :  { %1694 = vsyncadd [#allocation6], 4294966208 }
  0x1a   :  { %1695 = dma.done.wait [#allocation9], 10240  }
  0x1b   :  { %1696 = vsyncadd [#allocation9], 4294957056 }
  0x1c   :  { %1697 = dma.done.wait [#allocation12], 1024  }
  0x1d   :  { %1698 = vsyncadd [#allocation12], 4294966272  ;;  %v1038_v0 = vld [vmem:[#allocation5 + $0x20] sm:$0xf]  ;;  %v1414_v1 = vld [vmem:[#allocation5 + $0x2c] sm:$0xf0] }
  0x1e   :  { %v1412_v2 = vld [vmem:[#allocation5 + $0x24] sm:$0xf]  ;;  %v1039_v3 = vor.u32 %v1414_v1, %v1038_v0  ;;  %v1040_v4 = vld [vmem:[#allocation5 + $0x30] sm:$0xf0]  ;;  %v1046_v5 = vld [vmem:[#allocation5 + $0x28] sm:$0xf] }
  0x1f   :  { %v1415_v6 = vld [vmem:[#allocation5 + $0x34] sm:$0xf0]  ;;  %v1043_v7 = vor.u32 %v1412_v2, %v1040_v4  ;;  %v1022_v9 = vld [vmem:[#allocation5] sm:$0xf]  ;;  %v1410_v10 = vld [vmem:[#allocation5 + $0xc] sm:$0xf0] }
  0x20   :  { %v1047_v8 = vor.u32 %v1415_v6, %v1046_v5  ;;  %v1408_v11 = vld [vmem:[#allocation5 + $0x4] sm:$0xf]  ;;  %193 = vmatpush.bf16.msra.mxu3 %v1039_v3  ;;  %v1023_v12 = vor.u32 %v1410_v10, %v1022_v9  ;;  %v1024_v13 = vld [vmem:[#allocation5 + $0x10] sm:$0xf0]  ;;  %v1030_v14 = vld [vmem:[#allocation5 + $0x8] sm:$0xf] }
  0x21   :  { %v1411_v15 = vld [vmem:[#allocation5 + $0x14] sm:$0xf0]  ;;  %206 = vmatpush.bf16.msra.mxu1 %v1043_v7  ;;  %v1027_v16 = vor.u32 %v1408_v11, %v1024_v13  ;;  %vm183_vm0 = vcmask 261120   ;;  %v1413_v18 = vld [vmem:[#allocation5 + $0x2c] sm:$0xf] }
  0x22   :  { %219 = vmatpush.bf16.msra.mxu2 %v1047_v8  ;;  %v1031_v17 = vor.u32 %v1411_v15, %v1030_v14  ;;  %v1048_v19 = vld [vmem:[#allocation5 + $0x38] sm:$0xf0]  ;;  %v1409_v22 = vld [vmem:[#allocation5 + $0xc] sm:$0xf]  ;;  %v1178_v24 = vld [vmem:[#allocation8 + $0xf0] sm:$0xf] }
  0x23   :  { %v1782_v20 = vld [vmem:[#allocation2] sm:$0xf]  ;;  %v1051_v21 = vor.u32 %v1413_v18, %v1048_v19  ;;  %v1170_v26 = vld [vmem:[#allocation8 + $0xe0] sm:$0xf]  ;;  %v1445_v27 = vld [vmem:[#allocation8 + $0xe4] sm:$0xf0] }
  0x24   :  { %v1032_v23 = vld [vmem:[#allocation5 + $0x18] sm:$0xf0]  ;;  %194 = vmatpush.bf16.msra.mxu3 %v1023_v12  ;;  %v1114_v29 = vld [vmem:[#allocation8 + $0x70] sm:$0xf]  ;;  %v1171_v35 = vor.u32 %v1445_v27, %v1170_v26  ;;  %v1106_v37 = vld [vmem:[#allocation8 + $0x60] sm:$0xf] }
  0x25   :  { %v1447_v25 = vld [vmem:[#allocation8 + $0xf4] sm:$0xf0]  ;;  %v1242_v31 = vld [vmem:[#allocation8 + $0x170] sm:$0xf]  ;;  %207 = vmatpush.bf16.msra.mxu1 %v1027_v16  ;;  %v1035_v34 = vor.u32 %v1409_v22, %v1032_v23  ;;  %v1429_v38 = vld [vmem:[#allocation8 + $0x64] sm:$0xf0] }
  0x26   :  { %v1179_v28 = vor.u32 %v1447_v25, %v1178_v24  ;;  %v1431_v30 = vld [vmem:[#allocation8 + $0x74] sm:$0xf0]  ;;  %220 = vmatpush.bf16.msra.mxu2 %v1031_v17  ;;  %v1234_v39 = vld [vmem:[#allocation8 + $0x160] sm:$0xf]  ;;  %v1162_v40 = vld [vmem:[#allocation8 + $0xd0] sm:$0xf]  ;;  %v1107_v42 = vor.u32 %v1429_v38, %v1106_v37 }
  0x27   :  { %v1115_v32 = vor.u32 %v1431_v30, %v1114_v29  ;;  %v1463_v33 = vld [vmem:[#allocation8 + $0x174] sm:$0xf0]  ;;  %1052 = vmatmul.msk.bf16.vlgmr.msra.gmra.mxu3 %vm183_vm0, %v1782_v20  ;;  %v1461_v43 = vld [vmem:[#allocation8 + $0x164] sm:$0xf0]  ;;  %v1098_v44 = vld [vmem:[#allocation8 + $0x50] sm:$0xf] }
  0x28   :  { %232 = vmatpush.bf16.msrb.mxu3 %v1051_v21  ;;  %v1243_v36 = vor.u32 %v1463_v33, %v1242_v31  ;;  %v1443_v41 = vld [vmem:[#allocation8 + $0xd4] sm:$0xf0]  ;;  %1053 = vmatmul.msk.bf16.vlgmr.msra.gmra.mxu1 %vm183_vm0, %v1782_v20  ;;  %v1235_v46 = vor.u32 %v1461_v43, %v1234_v39  ;;  %v1226_v48 = vld [vmem:[#allocation8 + $0x150] sm:$0xf]  ;;  %v1154_v50 = vld [vmem:[#allocation8 + $0xc0] sm:$0xf] }
  0x29   :  { %650 = vmatpush.bf16.msrb.mxu1 %v1179_v28  ;;  %637 = vmatpush.bf16.msra.mxu0 %v1115_v32  ;;  %v1427_v45 = vld [vmem:[#allocation8 + $0x54] sm:$0xf0]  ;;  %v1163_v47 = vor.u32 %v1443_v41, %v1162_v40  ;;  %v1441_v51 = vld [vmem:[#allocation8 + $0xc4] sm:$0xf0]  ;;  %v1090_v53 = vld [vmem:[#allocation8 + $0x40] sm:$0xf] }
  0x2a   :  { %1054 = vmatmul.msk.bf16.vlgmr.msra.gmra.mxu2 %vm183_vm0, %v1782_v20  ;;  %v1459_v49 = vld [vmem:[#allocation8 + $0x154] sm:$0xf0]  ;;  %v1099_v52 = vor.u32 %v1427_v45, %v1098_v44  ;;  %v1425_v54 = vld [vmem:[#allocation8 + $0x44] sm:$0xf0]  ;;  %v1306_v56 = vld [vmem:[#allocation8 + $0x1f0] sm:$0xf]  ;;  %v1155_v58 = vor.u32 %v1441_v51, %v1154_v50 }
  0x2b   :  { %663 = vmatpush.bf16.msrb.mxu2 %v1243_v36  ;;  %v1227_v55 = vor.u32 %v1459_v49, %v1226_v48  ;;  %v1479_v57 = vld [vmem:[#allocation8 + $0x1f4] sm:$0xf0]  ;;  %v1218_v59 = vld [vmem:[#allocation8 + $0x140] sm:$0xf]  ;;  %v1457_v60 = vld [vmem:[#allocation8 + $0x144] sm:$0xf0]  ;;  %v1091_v0 = vor.u32 %v1425_v54, %v1090_v53 }
  0x2c   :  { %233 = vmatpush.bf16.msrb.mxu3 %v1035_v34  ;;  %v1307_v61 = vor.u32 %v1479_v57, %v1306_v56  ;;  %v1146_v62 = vld [vmem:[#allocation8 + $0xb0] sm:$0xf]  ;;  %v1439_v63 = vld [vmem:[#allocation8 + $0xb4] sm:$0xf0]  ;;  %v1298_v3 = vld [vmem:[#allocation8 + $0x1e0] sm:$0xf]  ;;  %v1219_v5 = vor.u32 %v1457_v60, %v1218_v59 }
  0x2d   :  { %651 = vmatpush.bf16.msrb.mxu1 %v1171_v35  ;;  %638 = vmatpush.bf16.msra.mxu0 %v1107_v42  ;;  %v1082_v1 = vld [vmem:[#allocation8 + $0x30] sm:$0xf]  ;;  %v1423_v2 = vld [vmem:[#allocation8 + $0x34] sm:$0xf0]  ;;  %v1477_v4 = vld [vmem:[#allocation8 + $0x1e4] sm:$0xf0]  ;;  %v1147_v7 = vor.u32 %v1439_v63, %v1146_v62 }
  0x2e   :  { %v1299_v6 = vor.u32 %v1477_v4, %v1298_v3  ;;  %v1138_v8 = vld [vmem:[#allocation8 + $0xa0] sm:$0xf]  ;;  %v1210_v9 = vld [vmem:[#allocation8 + $0x130] sm:$0xf]  ;;  %v1455_v10 = vld [vmem:[#allocation8 + $0x134] sm:$0xf0]  ;;  %v1083_v12 = vor.u32 %v1423_v2, %v1082_v1 }
  0x2f   :  { %664 = vmatpush.bf16.msrb.mxu2 %v1235_v46  ;;  %v1437_v11 = vld [vmem:[#allocation8 + $0xa4] sm:$0xf0]  ;;  %v1290_v13 = vld [vmem:[#allocation8 + $0x1d0] sm:$0xf]  ;;  %v1475_v14 = vld [vmem:[#allocation8 + $0x1d4] sm:$0xf0]  ;;  %v1211_v18 = vor.u32 %v1455_v10, %v1210_v9 }
  0x30   :  { %676 = vmatpush.bf16.msra.mxu3 %v1307_v61  ;;  %v1074_v15 = vld [vmem:[#allocation8 + $0x20] sm:$0xf]  ;;  %v1421_v16 = vld [vmem:[#allocation8 + $0x24] sm:$0xf0]  ;;  %v1291_v17 = vor.u32 %v1475_v14, %v1290_v13  ;;  %v1139_v21 = vor.u32 %v1437_v11, %v1138_v8  ;;  %v1130_v25 = vld [vmem:[#allocation8 + $0x90] sm:$0xf] }
  0x31   :  { %652 = vmatpush.bf16.msrb.mxu1 %v1163_v47  ;;  %639 = vmatpush.bf16.msra.mxu0 %v1099_v52  ;;  %v1202_v19 = vld [vmem:[#allocation8 + $0x120] sm:$0xf]  ;;  %v1453_v22 = vld [vmem:[#allocation8 + $0x124] sm:$0xf0]  ;;  %v1435_v26 = vld [vmem:[#allocation8 + $0x94] sm:$0xf0]  ;;  %v1075_v27 = vor.u32 %v1421_v16, %v1074_v15 }
  0x32   :  { %v1282_v23 = vld [vmem:[#allocation8 + $0x1c0] sm:$0xf]  ;;  %v1473_v24 = vld [vmem:[#allocation8 + $0x1c4] sm:$0xf0]  ;;  %v1066_v28 = vld [vmem:[#allocation8 + $0x10] sm:$0xf]  ;;  %v1203_v31 = vor.u32 %v1453_v22, %v1202_v19  ;;  %v1131_v32 = vor.u32 %v1435_v26, %v1130_v25 }
  0x33   :  { %665 = vmatpush.bf16.msrb.mxu2 %v1227_v55  ;;  %v1419_v29 = vld [vmem:[#allocation8 + $0x14] sm:$0xf0]  ;;  %v1283_v30 = vor.u32 %v1473_v24, %v1282_v23  ;;  %v1194_v33 = vld [vmem:[#allocation8 + $0x110] sm:$0xf]  ;;  %v1122_v35 = vld [vmem:[#allocation8 + $0x80] sm:$0xf] }
  0x34   :  { %677 = vmatpush.bf16.msra.mxu3 %v1299_v6  ;;  %v1451_v34 = vld [vmem:[#allocation8 + $0x114] sm:$0xf0]  ;;  %v1433_v36 = vld [vmem:[#allocation8 + $0x84] sm:$0xf0]  ;;  %v1446_v37 = vld [vmem:[#allocation8 + $0xf4] sm:$0xf]  ;;  %v1067_v38 = vor.u32 %v1419_v29, %v1066_v28 }
  0x35   :  { %653 = vmatpush.bf16.msrb.mxu1 %v1155_v58  ;;  %640 = vmatpush.bf16.msra.mxu0 %v1091_v0  ;;  %v1058_v39 = vld [vmem:[#allocation8] sm:$0xf]  ;;  %v1417_v40 = vld [vmem:[#allocation8 + $0x4] sm:$0xf0]  ;;  %v1195_v41 = vor.u32 %v1451_v34, %v1194_v33  ;;  %v1430_v42 = vld [vmem:[#allocation8 + $0x74] sm:$0xf]  ;;  %v1123_v44 = vor.u32 %v1433_v36, %v1122_v35 }
  0x36   :  { %v1116_v43 = vld [vmem:[#allocation8 + $0x78] sm:$0xf0]  ;;  %v1186_v45 = vld [vmem:[#allocation8 + $0x100] sm:$0xf]  ;;  %v1449_v46 = vld [vmem:[#allocation8 + $0x104] sm:$0xf0]  ;;  %v1059_v48 = vor.u32 %v1417_v40, %v1058_v39 }
  0x37   :  { %666 = vmatpush.bf16.msrb.mxu2 %v1219_v5  ;;  %1055 = vmatmul.msk.bf16.vlgmr.msrb.gmra.mxu3 %vm183_vm0, %v1782_v20  ;;  %v1180_v20 = vld [vmem:[#allocation8 + $0xf8] sm:$0xf0]  ;;  %v1462_v49 = vld [vmem:[#allocation8 + $0x174] sm:$0xf]  ;;  %v1444_v51 = vld [vmem:[#allocation8 + $0xe4] sm:$0xf]  ;;  %v1119_v53 = vor.u32 %v1430_v42, %v1116_v43  ;;  %v1187_v54 = vor.u32 %v1449_v46, %v1186_v45 }
  0x38   :  { %678 = vmatpush.bf16.msra.mxu3 %v1291_v17  ;;  %v1183_v47 = vor.u32 %v1446_v37, %v1180_v20  ;;  %v1244_v50 = vld [vmem:[#allocation8 + $0x178] sm:$0xf0]  ;;  %v1172_v52 = vld [vmem:[#allocation8 + $0xe8] sm:$0xf0]  ;;  %v1442_v57 = vld [vmem:[#allocation8 + $0xd4] sm:$0xf] }
  0x39   :  { %654 = vmatpush.bf16.msrb.mxu1 %v1147_v7  ;;  %641 = vmatpush.bf16.msra.mxu0 %v1083_v12  ;;  %v1247_v55 = vor.u32 %v1462_v49, %v1244_v50  ;;  %v1175_v56 = vor.u32 %v1444_v51, %v1172_v52  ;;  %v1164_v58 = vld [vmem:[#allocation8 + $0xd8] sm:$0xf0]  ;;  %v1274_v60 = vld [vmem:[#allocation8 + $0x1b0] sm:$0xf]  ;;  %v1471_v61 = vld [vmem:[#allocation8 + $0x1b4] sm:$0xf0] }
  0x3a   :  { %v1167_v59 = vor.u32 %v1442_v57, %v1164_v58  ;;  %v1275_v62 = vor.u32 %v1471_v61, %v1274_v60  ;;  %v1428_v63 = vld [vmem:[#allocation8 + $0x64] sm:$0xf]  ;;  %v1108_v0 = vld [vmem:[#allocation8 + $0x68] sm:$0xf0]  ;;  %v1266_v8 = vld [vmem:[#allocation8 + $0x1a0] sm:$0xf] }
  0x3b   :  { %667 = vmatpush.bf16.msrb.mxu2 %v1211_v18  ;;  %v1460_v1 = vld [vmem:[#allocation8 + $0x164] sm:$0xf]  ;;  %v1111_v2 = vor.u32 %v1428_v63, %v1108_v0  ;;  %v1236_v3 = vld [vmem:[#allocation8 + $0x168] sm:$0xf0]  ;;  %v1469_v9 = vld [vmem:[#allocation8 + $0x1a4] sm:$0xf0] }
  0x3c   :  { %679 = vmatpush.bf16.msra.mxu3 %v1283_v30  ;;  %v1239_v4 = vor.u32 %v1460_v1, %v1236_v3  ;;  %v1440_v5 = vld [vmem:[#allocation8 + $0xc4] sm:$0xf]  ;;  %v1156_v6 = vld [vmem:[#allocation8 + $0xc8] sm:$0xf0]  ;;  %v1267_v10 = vor.u32 %v1469_v9, %v1266_v8  ;;  %v1426_v11 = vld [vmem:[#allocation8 + $0x54] sm:$0xf] }
  0x3d   :  { %655 = vmatpush.bf16.msrb.mxu1 %v1139_v21  ;;  %642 = vmatpush.bf16.msra.mxu0 %v1075_v27  ;;  %v1159_v7 = vor.u32 %v1440_v5, %v1156_v6  ;;  %v1100_v12 = vld [vmem:[#allocation8 + $0x58] sm:$0xf0]  ;;  %v1458_v13 = vld [vmem:[#allocation8 + $0x154] sm:$0xf]  ;;  %v1258_v21 = vld [vmem:[#allocation8 + $0x190] sm:$0xf] }
  0x3e   :  { %v1103_v14 = vor.u32 %v1426_v11, %v1100_v12  ;;  %v1228_v15 = vld [vmem:[#allocation8 + $0x158] sm:$0xf0]  ;;  %v1438_v17 = vld [vmem:[#allocation8 + $0xb4] sm:$0xf]  ;;  %v1467_v22 = vld [vmem:[#allocation8 + $0x194] sm:$0xf0] }
  0x3f   :  { %668 = vmatpush.bf16.msrb.mxu2 %v1203_v31  ;;  %v1231_v16 = vor.u32 %v1458_v13, %v1228_v15  ;;  %v1148_v18 = vld [vmem:[#allocation8 + $0xb8] sm:$0xf0]  ;;  %v1259_v23 = vor.u32 %v1467_v22, %v1258_v21  ;;  %v1424_v24 = vld [vmem:[#allocation8 + $0x44] sm:$0xf]  ;;  %v1092_v25 = vld [vmem:[#allocation8 + $0x48] sm:$0xf0] }
  0x40   :  { %680 = vmatpush.bf16.msra.mxu3 %v1275_v62  ;;  %v1151_v19 = vor.u32 %v1438_v17, %v1148_v18  ;;  %v1456_v26 = vld [vmem:[#allocation8 + $0x144] sm:$0xf]  ;;  %v1095_v27 = vor.u32 %v1424_v24, %v1092_v25  ;;  %v1220_v28 = vld [vmem:[#allocation8 + $0x148] sm:$0xf0]  ;;  %v1250_v33 = vld [vmem:[#allocation8 + $0x180] sm:$0xf] }
  0x41   :  { %656 = vmatpush.bf16.msrb.mxu1 %v1131_v32  ;;  %643 = vmatpush.bf16.msra.mxu0 %v1067_v38  ;;  %v1223_v29 = vor.u32 %v1456_v26, %v1220_v28  ;;  %v1436_v30 = vld [vmem:[#allocation8 + $0xa4] sm:$0xf]  ;;  %v1140_v31 = vld [vmem:[#allocation8 + $0xa8] sm:$0xf0]  ;;  %v1465_v34 = vld [vmem:[#allocation8 + $0x184] sm:$0xf0] }
  0x42   :  { %v1143_v32 = vor.u32 %v1436_v30, %v1140_v31  ;;  %v1251_v35 = vor.u32 %v1465_v34, %v1250_v33  ;;  %v1422_v36 = vld [vmem:[#allocation8 + $0x34] sm:$0xf]  ;;  %v1084_v37 = vld [vmem:[#allocation8 + $0x38] sm:$0xf0]  ;;  %v1420_v46 = vld [vmem:[#allocation8 + $0x24] sm:$0xf] }
  0x43   :  { %669 = vmatpush.bf16.msrb.mxu2 %v1195_v41  ;;  %v1454_v38 = vld [vmem:[#allocation8 + $0x134] sm:$0xf]  ;;  %v1087_v20 = vor.u32 %v1422_v36, %v1084_v37  ;;  %v1212_v39 = vld [vmem:[#allocation8 + $0x138] sm:$0xf0]  ;;  %v1452_v49 = vld [vmem:[#allocation8 + $0x124] sm:$0xf] }
  0x44   :  { %681 = vmatpush.bf16.msra.mxu3 %v1267_v10  ;;  %v1478_v40 = vld [vmem:[#allocation8 + $0x1f4] sm:$0xf]  ;;  %v1308_v41 = vld [vmem:[#allocation8 + $0x1f8] sm:$0xf0]  ;;  %v1215_v42 = vor.u32 %v1454_v38, %v1212_v39  ;;  %v1204_v50 = vld [vmem:[#allocation8 + $0x128] sm:$0xf0] }
  0x45   :  { %657 = vmatpush.bf16.msrb.mxu1 %v1123_v44  ;;  %644 = vmatpush.bf16.msra.mxu0 %v1059_v48  ;;  %v1311_v43 = vor.u32 %v1478_v40, %v1308_v41  ;;  %v1434_v44 = vld [vmem:[#allocation8 + $0x94] sm:$0xf]  ;;  %v1132_v45 = vld [vmem:[#allocation8 + $0x98] sm:$0xf0]  ;;  %v1076_v48 = vld [vmem:[#allocation8 + $0x28] sm:$0xf0]  ;;  %v1207_v52 = vor.u32 %v1452_v49, %v1204_v50 }
  0x46   :  { %v1079_v51 = vor.u32 %v1420_v46, %v1076_v48  ;;  %v1124_v57 = vld [vmem:[#allocation8 + $0x88] sm:$0xf0]  ;;  %v1068_v60 = vld [vmem:[#allocation8 + $0x18] sm:$0xf0]  ;;  %v1450_v61 = vld [vmem:[#allocation8 + $0x114] sm:$0xf] }
  0x47   :  { %670 = vmatpush.bf16.msrb.mxu2 %v1187_v54  ;;  %v1300_v54 = vld [vmem:[#allocation8 + $0x1e8] sm:$0xf0]  ;;  %v1196_v63 = vld [vmem:[#allocation8 + $0x118] sm:$0xf0]  ;;  %v1474_v0 = vld [vmem:[#allocation8 + $0x1d4] sm:$0xf] }
  0x48   :  { %682 = vmatpush.bf16.msra.mxu3 %v1259_v23  ;;  %v1292_v1 = vld [vmem:[#allocation8 + $0x1d8] sm:$0xf0]  ;;  %v1060_v5 = vld [vmem:[#allocation8 + $0x8] sm:$0xf0]  ;;  %v1448_v6 = vld [vmem:[#allocation8 + $0x104] sm:$0xf] }
  0x49   :  { %702 = vmatpush.bf16.msra.mxu1 %v1183_v47  ;;  %689 = vmatpush.bf16.msrb.mxu0 %v1119_v53  ;;  %v1135_v47 = vor.u32 %v1434_v44, %v1132_v45  ;;  %v1476_v53 = vld [vmem:[#allocation8 + $0x1e4] sm:$0xf]  ;;  %v1295_v3 = vor.u32 %v1474_v0, %v1292_v1  ;;  %v1188_v8 = vld [vmem:[#allocation8 + $0x108] sm:$0xf0]  ;;  %v133_v13 = vld [vmem:[#allocation7] sm:$0xf] }
  0x4a   :  { %v1472_v9 = vld [vmem:[#allocation8 + $0x1c4] sm:$0xf]  ;;  %v1284_v10 = vld [vmem:[#allocation8 + $0x1c8] sm:$0xf0]  ;;  %v1191_v11 = vor.u32 %v1448_v6, %v1188_v8  ;;  %v1276_v15 = vld [vmem:[#allocation8 + $0x1b8] sm:$0xf0] }
  0x4b   :  { %715 = vmatpush.bf16.msra.mxu2 %v1247_v55  ;;  %v1432_v55 = vld [vmem:[#allocation8 + $0x84] sm:$0xf]  ;;  %v1287_v12 = vor.u32 %v1472_v9, %v1284_v10  ;;  %v136_v17 = vperm.slane %v133_v13, 1  ;;  %v1466_v23 = vld [vmem:[#allocation8 + $0x194] sm:$0xf]  ;;  %v135_v26 = vperm.slane %v133_v13, 0 }
  0x4c   :  { %683 = vmatpush.bf16.msra.mxu3 %v1251_v35  ;;  %v1127_v58 = vor.u32 %v1432_v55, %v1124_v57  ;;  %v1468_v18 = vld [vmem:[#allocation8 + $0x1a4] sm:$0xf]  ;;  %v1260_v24 = vld [vmem:[#allocation8 + $0x198] sm:$0xf0]  ;;  %v137_v28 = vperm.slane %v133_v13, 2  ;;  %v138_v44 = vperm.slane %v133_v13, 3 }
  0x4d   :  { %703 = vmatpush.bf16.msra.mxu1 %v1175_v56  ;;  %690 = vmatpush.bf16.msrb.mxu0 %v1111_v2  ;;  %v1303_v56 = vor.u32 %v1476_v53, %v1300_v54  ;;  %v1199_v2 = vor.u32 %v1450_v61, %v1196_v63  ;;  %v1464_v30 = vld [vmem:[#allocation8 + $0x184] sm:$0xf]  ;;  %v1252_v31 = vld [vmem:[#allocation8 + $0x188] sm:$0xf0]  ;;  %v1487_v50 = vld [vmem:[#allocation10 + $0x38] sm:$0xff] }
  0x4e   :  { %v1255_v37 = vor.u32 %v1464_v30, %v1252_v31  ;;  %v1484_v53 = vld [vmem:[#allocation10 + $0x20] sm:$0xff]  ;;  %v1483_v54 = vld [vmem:[#allocation10 + $0x18] sm:$0xff]  ;;  %v1494_v57 = vld [vmem:[#allocation10 + $0x70] sm:$0xff] }
  0x4f   :  { %716 = vmatpush.bf16.msra.mxu2 %v1239_v4  ;;  %v1416_v4 = vld [vmem:[#allocation8 + $0x4] sm:$0xf]  ;;  %v1495_v55 = vld [vmem:[#allocation10 + $0x78] sm:$0xff]  ;;  %v1490_v0 = vld [vmem:[#allocation10 + $0x50] sm:$0xff] }
  0x50   :  { %728 = vmatpush.bf16.msrb.mxu3 %v1311_v43  ;;  %v1492_v61 = vld [vmem:[#allocation10 + $0x60] sm:$0xff]  ;;  %v1491_v63 = vld [vmem:[#allocation10 + $0x58] sm:$0xff] }
  0x51   :  { %704 = vmatpush.bf16.msra.mxu1 %v1167_v59  ;;  %691 = vmatpush.bf16.msrb.mxu0 %v1103_v14  ;;  %v1418_v59 = vld [vmem:[#allocation8 + $0x14] sm:$0xf]  ;;  %v1503_v10 = vld [vmem:[#allocation11 + $0x38] sm:$0xff] }
  0x52   :  { %v1071_v62 = vor.u32 %v1418_v59, %v1068_v60  ;;  %v1470_v14 = vld [vmem:[#allocation8 + $0x1b4] sm:$0xf]  ;;  %v1493_v59 = vld [vmem:[#allocation10 + $0x68] sm:$0xff]  ;;  %v1480_v60 = vld [vmem:[#allocation10] sm:$0xff] }
  0x53   :  { %717 = vmatpush.bf16.msra.mxu2 %v1231_v16  ;;  %v1279_v16 = vor.u32 %v1470_v14, %v1276_v15  ;;  %v1502_v14 = vld [vmem:[#allocation11 + $0x30] sm:$0xff] }
  0x54   :  { %729 = vmatpush.bf16.msrb.mxu3 %v1303_v56  ;;  %v1482_v56 = vld [vmem:[#allocation10 + $0x10] sm:$0xff] }
  0x55   :  { %705 = vmatpush.bf16.msra.mxu1 %v1159_v7  ;;  %692 = vmatpush.bf16.msrb.mxu0 %v1095_v27  ;;  %v1063_v7 = vor.u32 %v1416_v4, %v1060_v5  ;;  %v311_v5 = vld [vmem:[%s1808_s4] sm:$0x3] }
  0x56   :  { %v313_v8 = vperm.slane %v311_v5, 0 }
  0x57   :  { %718 = vmatpush.bf16.msra.mxu2 %v1223_v29  ;;  %v1263_v29 = vor.u32 %v1466_v23, %v1260_v24  ;;  %v314_v24 = vperm.slane %v311_v5, 1 }
  0x58   :  { %730 = vmatpush.bf16.msrb.mxu3 %v1295_v3  ;;  %v1489_v3 = vld [vmem:[#allocation10 + $0x48] sm:$0xff] }
  0x59   :  { %706 = vmatpush.bf16.msra.mxu1 %v1151_v19  ;;  %693 = vmatpush.bf16.msrb.mxu0 %v1087_v20  ;;  %v1268_v19 = vld [vmem:[#allocation8 + $0x1a8] sm:$0xf0] }
  0x5a   :  { %v1271_v21 = vor.u32 %v1468_v18, %v1268_v19 }
  0x5b   :  { %719 = vmatpush.bf16.msra.mxu2 %v1215_v42 }
  0x5c   :  { %731 = vmatpush.bf16.msrb.mxu3 %v1287_v12 }
  0x5d   :  { %707 = vmatpush.bf16.msra.mxu1 %v1143_v32  ;;  %694 = vmatpush.bf16.msrb.mxu0 %v1079_v51  ;;  %v1486_v51 = vld [vmem:[#allocation10 + $0x30] sm:$0xff] }
  0x5f   :  { %720 = vmatpush.bf16.msra.mxu2 %v1207_v52  ;;  %v1485_v52 = vld [vmem:[#allocation10 + $0x28] sm:$0xff] }
  0x60   :  { %732 = vmatpush.bf16.msrb.mxu3 %v1279_v16 }
  0x61   :  { %708 = vmatpush.bf16.msra.mxu1 %v1135_v47  ;;  %695 = vmatpush.bf16.msrb.mxu0 %v1071_v62 }
  0x63   :  { %721 = vmatpush.bf16.msra.mxu2 %v1199_v2 }
  0x64   :  { %733 = vmatpush.bf16.msrb.mxu3 %v1271_v21 }
  0x65   :  { %709 = vmatpush.bf16.msra.mxu1 %v1127_v58  ;;  %696 = vmatpush.bf16.msrb.mxu0 %v1063_v7  ;;  %v1481_v58 = vld [vmem:[#allocation10 + $0x8] sm:$0xff]  ;;  %v1488_v7 = vld [vmem:[#allocation10 + $0x40] sm:$0xff] }
  0x67   :  { %722 = vmatpush.bf16.msra.mxu2 %v1191_v11 }
  0x68   :  { %734 = vmatpush.bf16.msrb.mxu3 %v1263_v29 }
  0x6c   :  { %735 = vmatpush.bf16.msrb.mxu3 %v1255_v37  ;;  %v1500_v37 = vld [vmem:[#allocation11 + $0x20] sm:$0xff] }
  0xa5   :  { %v209_v22 = vpop.f32.mrf.mxu1 }
  0xa6   :  { %v210_v25 = vadd.f32 %v209_v22, %v136_v17 }
  0xa8   :  { %v240_v27 = vmax.f32 %v210_v25, 0.0 }
  0xaa   :  { %v244_v32 = vpack.c.bf16 %v240_v27, %v240_v27  ;;  %v196_v33 = vpop.f32.mrf.mxu3 }
  0xab   :  { %v197_v34 = vadd.f32 %v196_v33, %v135_v26 }
  0xac   :  { %658 = vmatmul.bf16.vlgmr.msrb.gmra.mxu1 %v244_v32 }
  0xad   :  { %v222_v35 = vpop.f32.mrf.mxu2  ;;  %v239_v38 = vmax.f32 %v197_v34, 0.0  ;;  %v211_v20 = vpop.f32.mrf.mxu1  ;;  %890 = vmatpush.bf16.msrb.mxu1 %v1495_v55 }
  0xae   :  { %v223_v36 = vadd.f32 %v222_v35, %v137_v28  ;;  %v1498_v20 = vld [vmem:[#allocation11 + $0x10] sm:$0xff] }
  0xaf   :  { %v243_v40 = vpack.c.bf16 %v239_v38, %v239_v38  ;;  %v1499_v38 = vld [vmem:[#allocation11 + $0x18] sm:$0xff] }
  0xb0   :  { %v241_v39 = vmax.f32 %v223_v36, 0.0  ;;  %v1501_v36 = vld [vmem:[#allocation11 + $0x28] sm:$0xff] }
  0xb1   :  { %645 = vmatmul.bf16.vlgmr.msra.gmra.mxu0 %v243_v40  ;;  %891 = vmatpush.bf16.msrb.mxu1 %v1494_v57 }
  0xb2   :  { %v245_v41 = vpack.c.bf16 %v241_v39, %v241_v39  ;;  %v198_v42 = vpop.f32.mrf.mxu3  ;;  %877 = vmatpush.bf16.msra.mxu0 %v1487_v50  ;;  %v1497_v39 = vld [vmem:[#allocation11 + $0x8] sm:$0xff]  ;;  %v986_v50 = vlaneseq }
  0xb4   :  { %671 = vmatmul.bf16.vlgmr.msrb.gmra.mxu2 %v245_v41 }
  0xb5   :  { %v224_v43 = vpop.f32.mrf.mxu2  ;;  %892 = vmatpush.bf16.msrb.mxu1 %v1493_v59  ;;  %973 = vmatpush.bf16.msrb.mxu2 %v1503_v10 }
  0xb6   :  { %878 = vmatpush.bf16.msra.mxu0 %v1486_v51  ;;  %v1517_v43 = vld [vmem:[%s1810_s6] ss:$0 sm:$0xff]  ;;  %v987_v51 = vand.u32 127, %v986_v50  ;;  %s1713_s6 = smov [#allocation13]  }
  0xb7   :  { %s1005_s1 = sshll.u32 %s1713_s6, 4  ;;  %s1006_s1 = int_to_ptr.vmem [resolvable:$true] %s1005_s1 }
  0xb8   :  { %vm988_vm1 = vcmp.lt.s32.totalorder %v987_v51, 8 }
  0xb9   :  { %893 = vmatpush.bf16.msrb.mxu1 %v1492_v61  ;;  %974 = vmatpush.bf16.msrb.mxu2 %v1502_v14 }
  0xba   :  { %v235_v45 = vpop.f32.mrf.mxu3  ;;  %879 = vmatpush.bf16.msra.mxu0 %v1485_v52  ;;  %v1518_v52 = vld [vmem:[%s1812_s8] ss:$0 sm:$0xff]  ;;  %s1007_s8 = sshll.u32 %s1813_s9, 4  ;;  %s1008_s8 = int_to_ptr.hbm [resolvable:$true] %s1007_s8 }
  0xbb   :  { %v236_v46 = vadd.f32 %v235_v45, %v138_v44 }
  0xbc   :  { %710 = vmatmul.bf16.vlgmr.msra.gmra.mxu1 %v244_v32 }
  0xbd   :  { %v242_v47 = vmax.f32 %v236_v46, 0.0  ;;  %894 = vmatpush.bf16.msrb.mxu1 %v1491_v63  ;;  %975 = vmatpush.bf16.msrb.mxu2 %v1501_v36 }
  0xbe   :  { %880 = vmatpush.bf16.msra.mxu0 %v1484_v53 }
  0xbf   :  { %v246_v48 = vpack.c.bf16 %v242_v47, %v242_v47 }
  0xc1   :  { %684 = vmatmul.bf16.vlgmr.msra.gmra.mxu3 %v246_v48  ;;  %697 = vmatmul.bf16.vlgmr.msrb.gmra.mxu0 %v243_v40  ;;  %v1496_v40 = vld [vmem:[#allocation11] sm:$0xff] }
  0xc2   :  { %v237_v49 = vpop.f32.mrf.mxu3  ;;  %881 = vmatpush.bf16.msra.mxu0 %v1483_v54  ;;  %895 = vmatpush.bf16.msrb.mxu1 %v1490_v0 }
  0xc3   :  { %976 = vmatpush.bf16.msrb.mxu2 %v1500_v37 }
  0xc4   :  { %723 = vmatmul.bf16.vlgmr.msra.gmra.mxu2 %v245_v41 }
  0xc6   :  { %882 = vmatpush.bf16.msra.mxu0 %v1482_v56  ;;  %896 = vmatpush.bf16.msrb.mxu1 %v1489_v3 }
  0xc7   :  { %977 = vmatpush.bf16.msrb.mxu2 %v1499_v38 }
  0xca   :  { %883 = vmatpush.bf16.msra.mxu0 %v1481_v58  ;;  %897 = vmatpush.bf16.msrb.mxu1 %v1488_v7 }
  0xcb   :  { %978 = vmatpush.bf16.msrb.mxu2 %v1498_v20 }
  0xce   :  { %884 = vmatpush.bf16.msra.mxu0 %v1480_v60 }
  0xcf   :  { %979 = vmatpush.bf16.msrb.mxu2 %v1497_v39 }
  0xd1   :  { %736 = vmatmul.bf16.vlgmr.msrb.gmra.mxu3 %v246_v48 }
  0xd3   :  { %980 = vmatpush.bf16.msrb.mxu2 %v1496_v40 }
 0x129   :  { %v659_v62 = vpop.f32.mrf.mxu1 }
 0x12e   :  { %v646_v1 = vpop.f32.mrf.mxu0 }
 0x12f   :  { %v647_v11 = vadd.f32 %v646_v1, %v313_v8 }
 0x131   :  { %v661_v2 = vpop.f32.mrf.mxu1  ;;  %v660_v15 = vadd.f32 %v659_v62, %v647_v11 }
 0x136   :  { %v648_v6 = vpop.f32.mrf.mxu0 }
 0x137   :  { %v672_v4 = vpop.f32.mrf.mxu2 }
 0x138   :  { %v673_v17 = vadd.f32 %v672_v4, %v660_v15 }
 0x139   :  { %v711_v9 = vpop.f32.mrf.mxu1 }
 0x13e   :  { %v698_v13 = vpop.f32.mrf.mxu0 }
 0x13f   :  { %v674_v12 = vpop.f32.mrf.mxu2  ;;  %v699_v27 = vadd.f32 %v698_v13, %v314_v24 }
 0x141   :  { %v713_v16 = vpop.f32.mrf.mxu1  ;;  %v712_v29 = vadd.f32 %v711_v9, %v699_v27 }
 0x144   :  { %v685_v18 = vpop.f32.mrf.mxu3 }
 0x145   :  { %v686_v19 = vadd.f32 %v685_v18, %v673_v17 }
 0x146   :  { %v700_v22 = vpop.f32.mrf.mxu0 }
 0x147   :  { %v724_v21 = vpop.f32.mrf.mxu2  ;;  %v741_v23 = vmax.f32 %v686_v19, 0.0 }
 0x148   :  { %v725_v30 = vadd.f32 %v724_v21, %v712_v29 }
 0x149   :  { %v743_v25 = vpack.c.bf16 %v741_v23, %v741_v23 }
 0x14b   :  { %885 = vmatmul.bf16.vlgmr.msra.gmra.mxu0 %v743_v25 }
 0x14c   :  { %v687_v26 = vpop.f32.mrf.mxu3 }
 0x14f   :  { %v726_v28 = vpop.f32.mrf.mxu2 }
 0x154   :  { %v737_v31 = vpop.f32.mrf.mxu3 }
 0x155   :  { %v738_v32 = vadd.f32 %v737_v31, %v725_v30 }
 0x157   :  { %v742_v33 = vmax.f32 %v738_v32, 0.0 }
 0x159   :  { %v744_v34 = vpack.c.bf16 %v742_v33, %v742_v33 }
 0x15b   :  { %898 = vmatmul.bf16.vlgmr.msrb.gmra.mxu1 %v744_v34 }
 0x15c   :  { %v739_v35 = vpop.f32.mrf.mxu3 }
 0x1c8   :  { %v886_v41 = vpop.f32.mrf.mxu0 }
 0x1c9   :  { %v887_v44 = vadd.f32 %v1517_v43, %v886_v41 }
 0x1d0   :  { %v888_v42 = vpop.f32.mrf.mxu0 }
 0x1d8   :  { %v899_v45 = vpop.f32.mrf.mxu1 }
 0x1d9   :  { %v900_v46 = vadd.f32 %v899_v45, %v887_v44 }
 0x1db   :  { %v903_v47 = vmax.f32 %v900_v46, 0.0 }
 0x1dd   :  { %v904_v48 = vpack.c.bf16 %v903_v47, %v903_v47 }
 0x1df   :  { %981 = vmatmul.bf16.vlgmr.msrb.gmra.mxu2 %v904_v48 }
 0x1e0   :  { %v901_v49 = vpop.f32.mrf.mxu1 }
 0x262   :  { %v982_v53 = vpop.f32.mrf.mxu2 }
 0x263   :  { %v983_v54 = vadd.f32 %v1518_v52, %v982_v53 }
 0x265   :  { %v989_v55 = vsel %vm988_vm1, %v983_v54, -inf }
 0x266   :  { %990 = vmax.xlane.f32.xlu0 %v989_v55 }
 0x26a   :  { %v984_v56 = vpop.f32.mrf.mxu2 }
 0x2d9   :  { %v991_v57 = vpop.xlane.xlu0 %990 }
 0x2da   :  { %v992_v58 = vsub.f32 %v989_v55, %v991_v57 }
 0x2dc   :  { %v993_v59 = vmul.f32 1.442695, %v992_v58 }
 0x2de   :  { %1519 = vpow2.f32 %v993_v59 }
 0x2e4   :  { %v1520_v60 = vpop.eup %1519 }
 0x2e5   :  { %995 = vadd.xlane.f32.xlu0 %v1520_v60 }
 0x358   :  { %v996_v61 = vpop.xlane.xlu0 %995 }
 0x359   :  { %1521 = vrcp.f32 %v996_v61 }
 0x35f   :  { %v1522_v62 = vpop.eup %1521 }
 0x360   :  { %v998_v63 = vmul.f32 %v1522_v62, %v1520_v60 }
 0x362   :  { %999 = vst [vmem:[#allocation13] sm:$0xff] %v998_v63 }
 0x363   :  { %1010 = dma.vmem_to_hbm [thread:$0]  %s1006_s1, 128, %s1008_s8, [#allocation4]  }
 0x364   :  { %1699 = dma.done.wait [#allocation4], 128  }
 0x365   :  { %1700 = vsyncadd [#allocation4], 4294967168 }
 0x366   :  { %1015 = vsyncpa [#allocation3], 1 }
 0x367   :  { %1016 = vsyncpa [#allocation6], 1 }
 0x368   :  { %1017 = vsyncpa [#allocation9], 1 }
 0x369   :  { %1018 = vsyncpa [#allocation12], 1 }
 0x36a   :  { %1019 = vsyncpa [#allocation4], 1 }

</bundles_post_ra>
